<compile_context>
chip_gen: v7x
topology: tpu7x:2x2x1
jax: 0.10.0
libtpu: 0.0.40
codegen_flags: <defaults>
</compile_context>

<pallas_src>
import functools

import jax
import jax.numpy as jnp
from jax import lax
from jax.experimental import pallas as pl
from jax.experimental.pallas import tpu as pltpu


def _round_up(x, m):
    return (x + m - 1) // m * m


# ----------------------------------------------------------------------------
# Kernel
# ----------------------------------------------------------------------------
def _wd_kernel(nlayers, nfield,
               ids_ref, vals_ref,            # (tm, F) int32 / f32, per-tile VMEM
               emb_ref, sel_ref,             # fused emb+wide table, wide selector
               wfirst_ref, bfirst_ref,       # per-field-stacked first layer
               *rest):                       # [W1,b1,...,Wout,bout] (if nlayers>=1), out_ref
    out_ref = rest[-1]
    wb = rest[:-1]

    tm = ids_ref.shape[0]
    nfeat_pad = emb_ref.shape[0]
    n1 = wfirst_ref.shape[2]

    feat_iota = lax.broadcasted_iota(jnp.int32, (tm, nfeat_pad), 1)
    emb = emb_ref[...]                                       # (nfeat_pad, EW) bf16

    # fused gather (scaled one-hot on the MXU) + wide accumulation + layer-0 matmul
    acc = jnp.zeros((tm, n1), jnp.float32) + bfirst_ref[...]  # bias broadcast
    gsum = jnp.zeros((tm, emb.shape[1]), jnp.float32)
    for f in range(nfield):                                   # static, small
        oh = jnp.where(ids_ref[:, f:f + 1] == feat_iota,
                       vals_ref[:, f:f + 1], 0.0).astype(jnp.bfloat16)
        ge = jnp.dot(oh, emb, preferred_element_type=jnp.float32)   # (tm, EW) f32
        gsum = gsum + ge
        acc = acc + jnp.dot(ge.astype(jnp.bfloat16), wfirst_ref[f],
                            preferred_element_type=jnp.float32)

    # wide branch: route the lin_w lanes of gsum to the padded output lanes (MXU)
    wide = jnp.dot(gsum.astype(jnp.bfloat16), sel_ref[...],
                   preferred_element_type=jnp.float32)        # (tm, NOUT_PAD) f32

    if nlayers == 0:
        # layer-0 IS the output Linear (no ReLU); lin_b already folded into its bias
        out_ref[...] = acc + wide
    else:
        h = jnp.maximum(acc, 0.0)                             # ReLU (Dropout=identity, eval)
        for li in range(nlayers - 1):
            w = wb[2 * li][...]
            b = wb[2 * li + 1][...]
            h = jnp.dot(h.astype(jnp.bfloat16), w,
                        preferred_element_type=jnp.float32) + b
            h = jnp.maximum(h, 0.0)
        w = wb[2 * (nlayers - 1)][...]
        b = wb[2 * (nlayers - 1) + 1][...]
        deep = jnp.dot(h.astype(jnp.bfloat16), w,
                       preferred_element_type=jnp.float32) + b
        out_ref[...] = deep + wide


# ----------------------------------------------------------------------------
# Wrapper
# ----------------------------------------------------------------------------
def wd_forward_pallas(ids, vals, params, tm=None, eps=1e-5):
    """Wide & Deep forward (eval semantics). ids/vals: [B, F]; returns [B, noutput] f32."""
    B, F = ids.shape
    nfeat, E = params['emb'].shape
    nout = params['b_out'].shape[0]
    nlayers = len(params['hidden'])
    f32, bf16 = jnp.float32, jnp.bfloat16

    EW = E + nout                       # emb lanes + wide lanes
    EW_pad = _round_up(EW, 16)          # bf16 sublane-pair friendly, NOT 128-padded
    NOUT_PAD = _round_up(nout, 128)     # lane-dense output store
    nfeat_pad = _round_up(nfeat, 16)

    # batch tiling: large tiles, but >=2 grid steps when possible (megacore / v7x 2-TC)
    if tm is None:
        tm_full = _round_up(B, 8)
        tm = min(512, tm_full)
        if tm == tm_full and B >= 16:
            tm = _round_up((B + 1) // 2, 8)
    B_pad = _round_up(B, tm)
    nb = B_pad // tm

    # fused embedding+wide table: lanes [0:E] = emb row, lanes [E:E+nout] = lin_w row
    emb_ext = jnp.zeros((nfeat_pad, EW_pad), f32)
    emb_ext = emb_ext.at[:nfeat, :E].set(params['emb'])
    emb_ext = emb_ext.at[:nfeat, E:E + nout].set(params['lin_w'])
    emb_ext = emb_ext.astype(bf16)

    # constant selector: gsum lanes [E:E+nout] -> output lanes [0:nout]
    sel = jnp.zeros((EW_pad, NOUT_PAD), f32)
    sel = sel.at[E:E + nout, :nout].set(jnp.eye(nout, dtype=f32)).astype(bf16)

    # fold eval-mode BN into Linear weights/biases
    folded = []
    for (W, b, g, be, mu, var) in params['hidden']:
        s = g / jnp.sqrt(var + eps)
        folded.append((W * s[None, :], (b - mu) * s + be))

    lin_b = params['lin_b']
    if nlayers >= 1:
        W0, b0 = folded[0]
        H0 = W0.shape[1]
        N1 = _round_up(H0, 128)
    else:
        W0, b0 = params['w_out'], params['b_out'] + lin_b   # lin_b folded into output bias
        H0 = nout
        N1 = NOUT_PAD
    # first layer split per field; wide/padding rows are zero (so wide lanes don't leak)
    w_first = jnp.zeros((F, EW_pad, N1), f32)
    w_first = w_first.at[:, :E, :H0].set(W0.reshape(F, E, H0)).astype(bf16)
    b_first = jnp.zeros((1, N1), f32).at[0, :H0].set(b0)

    flat_wb = []
    prev_real, prev_pad = H0, N1
    for li in range(1, nlayers):
        W, bb = folded[li]
        H = W.shape[1]
        Hp = _round_up(H, 128)
        flat_wb.append(jnp.zeros((prev_pad, Hp), f32).at[:prev_real, :H].set(W).astype(bf16))
        flat_wb.append(jnp.zeros((1, Hp), f32).at[0, :H].set(bb))
        prev_real, prev_pad = H, Hp
    if nlayers >= 1:
        Wo = params['w_out']
        bo = params['b_out'] + lin_b                        # lin_b folded into output bias
        flat_wb.append(jnp.zeros((prev_pad, NOUT_PAD), f32)
                       .at[:prev_real, :nout].set(Wo).astype(bf16))
        flat_wb.append(jnp.zeros((1, NOUT_PAD), f32).at[0, :nout].set(bo))

    # pad batch; ids/vals streamed per grid step as (tm, F) VMEM blocks
    ids_p = jnp.zeros((B_pad, F), jnp.int32).at[:B].set(ids.astype(jnp.int32))
    vals_p = jnp.zeros((B_pad, F), f32).at[:B].set(vals.astype(f32))

    def const_spec(a):
        zeros = (0,) * a.ndim
        return pl.BlockSpec(a.shape, lambda i, _z=zeros: _z)

    def batch_spec():
        return pl.BlockSpec((tm, F), lambda i: (i, 0))

    in_specs = [batch_spec(), batch_spec(),
                const_spec(emb_ext), const_spec(sel),
                const_spec(w_first), const_spec(b_first)]
    in_specs += [const_spec(a) for a in flat_wb]
    out_spec = pl.BlockSpec((tm, NOUT_PAD), lambda i: (i, 0))

    # cost estimate / VMEM budget
    widths = [N1] + [int(w.shape[1]) for w in flat_wb[0::2]]
    flops = 2 * B_pad * F * (nfeat_pad * EW_pad + EW_pad * N1)
    flops += sum(2 * B_pad * a * b for a, b in zip(widths[:-1], widths[1:]))
    flops += 2 * B_pad * EW_pad * NOUT_PAD
    const_bytes = sum(int(a.size) * a.dtype.itemsize
                      for a in [emb_ext, sel, w_first, b_first, *flat_wb])
    bytes_accessed = int(const_bytes + ids_p.size * 4 + vals_p.size * 4
                         + B_pad * NOUT_PAD * 4)
    cost = pl.CostEstimate(flops=int(flops), transcendentals=0,
                           bytes_accessed=bytes_accessed)

    block_bytes = tm * F * 8 + tm * NOUT_PAD * 4
    live_bytes = tm * (nfeat_pad + EW_pad + max(widths) + NOUT_PAD) * 4
    vmem_limit = int(min(max(2 * (const_bytes + block_bytes) + 4 * live_bytes
                             + (4 << 20), 16 << 20), 56 << 20))   # <=56 MiB: v7x-safe

    kernel = functools.partial(_wd_kernel, nlayers, F)

    out = pl.pallas_call(
        kernel,
        out_shape=jax.ShapeDtypeStruct((B_pad, NOUT_PAD), jnp.float32),
        grid_spec=pltpu.PrefetchScalarGridSpec(
            num_scalar_prefetch=0,
            grid=(nb,),
            in_specs=in_specs,
            out_specs=out_spec),
        compiler_params=pltpu.CompilerParams(
            dimension_semantics=("parallel",),
            vmem_limit_bytes=vmem_limit),
        cost_estimate=cost,
    )(ids_p, vals_p, emb_ext, sel, w_first, b_first, *flat_wb)

    return out[:B, :nout]


# ----------------------------------------------------------------------------
# Pure-JAX reference (PyTorch .eval() semantics) and param init
# ----------------------------------------------------------------------------
def wd_reference(ids, vals, p, eps=1e-5):
    x_emb = p['emb'][ids] * vals[..., None]                       # B,F,E
    wide = (p['lin_w'][ids] * vals[..., None]).sum(axis=1) + p['lin_b']
    h = x_emb.reshape(ids.shape[0], -1)
    for (W, b, g, be, mu, var) in p['hidden']:
        h = h @ W + b
        h = (h - mu) / jnp.sqrt(var + eps) * g + be               # BN eval
        h = jnp.maximum(h, 0.0)                                   # ReLU (dropout=identity)
    deep = h @ p['w_out'] + p['b_out']
    return wide + deep


def init_params(key, nfield, nfeat, nemb, mlp_layers, mlp_hid, noutput):
    ks = iter(jax.random.split(key, 8 + 6 * mlp_layers))
    p = {}
    p['emb'] = 0.1 * jax.random.normal(next(ks), (nfeat, nemb), jnp.float32)
    p['lin_w'] = 0.1 * jax.random.normal(next(ks), (nfeat, noutput), jnp.float32)
    p['lin_b'] = 0.1 * jax.random.normal(next(ks), (noutput,), jnp.float32)
    hidden = []
    fan_in = nfield * nemb
    for _ in range(mlp_layers):
        W = jax.random.normal(next(ks), (fan_in, mlp_hid), jnp.float32) / jnp.sqrt(fan_in)
        b = 0.1 * jax.random.normal(next(ks), (mlp_hid,), jnp.float32)
        g = 1.0 + 0.1 * jax.random.normal(next(ks), (mlp_hid,), jnp.float32)
        be = 0.1 * jax.random.normal(next(ks), (mlp_hid,), jnp.float32)
        mu = 0.1 * jax.random.normal(next(ks), (mlp_hid,), jnp.float32)
        var = 1.0 + 0.1 * jax.random.uniform(next(ks), (mlp_hid,), jnp.float32)
        hidden.append((W, b, g, be, mu, var))
        fan_in = mlp_hid
    p['hidden'] = hidden
    p['w_out'] = jax.random.normal(next(ks), (fan_in, noutput), jnp.float32) / jnp.sqrt(fan_in)
    p['b_out'] = 0.1 * jax.random.normal(next(ks), (noutput,), jnp.float32)
    return p


if __name__ == "__main__":
    key = jax.random.PRNGKey(0)
    nfield, nfeat, nemb = 4, 100, 16
    mlp_layers, mlp_hid, dropout, noutput = 2, 64, 0.2, 1   # dropout unused (eval)
    B = 32

    k_param, k_id, k_val = jax.random.split(key, 3)
    params = init_params(k_param, nfield, nfeat, nemb, mlp_layers, mlp_hid, noutput)
    ids = jax.random.randint(k_id, (B, nfield), 0, nfeat, dtype=jnp.int32)
    vals = jax.random.uniform(k_val, (B, nfield), jnp.float32)

    y = jax.jit(wd_forward_pallas)(ids, vals, params)
    y = jax.block_until_ready(y)

    y_ref = wd_reference(ids, vals, params)
    assert y.shape == (B, noutput), y.shape
    max_err = float(jnp.max(jnp.abs(y - y_ref)))
    assert max_err < 5e-2, f"mismatch vs reference: max abs err = {max_err}"

    print("KERNEL_OK")
</pallas_src>

<mosaic_0001>
module attributes {stable_mosaic.version = 11 : i64} {
  func.func @_wd_kernel(%arg0: i32, %arg1: memref<16x4xi32, #tpu.memory_space<vmem>>, %arg2: memref<16x4xf32, #tpu.memory_space<vmem>>, %arg3: memref<112x32xbf16, #tpu.memory_space<vmem>>, %arg4: memref<32x128xbf16, #tpu.memory_space<vmem>>, %arg5: memref<4x32x128xbf16, #tpu.memory_space<vmem>>, %arg6: memref<1x128xf32, #tpu.memory_space<vmem>>, %arg7: memref<128x128xbf16, #tpu.memory_space<vmem>>, %arg8: memref<1x128xf32, #tpu.memory_space<vmem>>, %arg9: memref<128x128xbf16, #tpu.memory_space<vmem>>, %arg10: memref<1x128xf32, #tpu.memory_space<vmem>>, %arg11: memref<16x128xf32, #tpu.memory_space<vmem>>) attributes {dimension_semantics = [#tpu.dimension_semantics<parallel>], iteration_bounds = array<i64: 2>, scalar_prefetch = 0 : i64, scratch_operands = 0 : i64, tpu.core_type = #tpu.core_type<tc>, window_params = [{transform_indices = @transform_0, window_bounds = array<i64: 16, 4>}, {transform_indices = @transform_1, window_bounds = array<i64: 16, 4>}, {pipeline_mode = #tpu.pipeline_mode<synchronous>, transform_indices = @transform_2, window_bounds = array<i64: 112, 32>}, {pipeline_mode = #tpu.pipeline_mode<synchronous>, transform_indices = @transform_3, window_bounds = array<i64: 32, 128>}, {pipeline_mode = #tpu.pipeline_mode<synchronous>, transform_indices = @transform_4, window_bounds = array<i64: 4, 32, 128>}, {pipeline_mode = #tpu.pipeline_mode<synchronous>, transform_indices = @transform_5, window_bounds = array<i64: 1, 128>}, {pipeline_mode = #tpu.pipeline_mode<synchronous>, transform_indices = @transform_6, window_bounds = array<i64: 128, 128>}, {pipeline_mode = #tpu.pipeline_mode<synchronous>, transform_indices = @transform_7, window_bounds = array<i64: 1, 128>}, {pipeline_mode = #tpu.pipeline_mode<synchronous>, transform_indices = @transform_8, window_bounds = array<i64: 128, 128>}, {pipeline_mode = #tpu.pipeline_mode<synchronous>, transform_indices = @transform_9, window_bounds = array<i64: 1, 128>}, {transform_indices = @transform_10, window_bounds = array<i64: 16, 128>}]} {
    %0 = tpu.iota {dimensions = array<i32: 1>} : vector<16x112xi32>
    %c0 = arith.constant 0 : index
    %c0_0 = arith.constant 0 : index
    %1 = vector.load %arg3[%c0, %c0_0] : memref<112x32xbf16, #tpu.memory_space<vmem>>, vector<112x32xbf16>
    %cst = arith.constant 0.000000e+00 : f32
    %2 = vector.broadcast %cst : f32 to vector<16x128xf32>
    %c0_1 = arith.constant 0 : index
    %c0_2 = arith.constant 0 : index
    %3 = vector.load %arg6[%c0_1, %c0_2] : memref<1x128xf32, #tpu.memory_space<vmem>>, vector<1x128xf32>
    %4 = vector.broadcast %3 : vector<1x128xf32> to vector<16x128xf32>
    %5 = arith.addf %2, %4 : vector<16x128xf32>
    %cst_3 = arith.constant 0.000000e+00 : f32
    %6 = vector.broadcast %cst_3 : f32 to vector<16x32xf32>
    %c0_4 = arith.constant 0 : index
    %c0_5 = arith.constant 0 : index
    %7 = vector.load %arg1[%c0_4, %c0_5] : memref<16x4xi32, #tpu.memory_space<vmem>>, vector<16x1xi32>
    %8 = vector.broadcast %7 : vector<16x1xi32> to vector<16x112xi32>
    %9 = arith.cmpi eq, %8, %0 : vector<16x112xi32>
    %c0_6 = arith.constant 0 : index
    %c0_7 = arith.constant 0 : index
    %10 = vector.load %arg2[%c0_6, %c0_7] : memref<16x4xf32, #tpu.memory_space<vmem>>, vector<16x1xf32>
    %cst_8 = arith.constant 0.000000e+00 : f32
    %11 = vector.shape_cast %10 : vector<16x1xf32> to vector<16x1xf32>
    %12 = vector.broadcast %11 : vector<16x1xf32> to vector<16x112xf32>
    %13 = vector.broadcast %cst_8 : f32 to vector<16x112xf32>
    %14 = arith.select %9, %12, %13 : vector<16x112xi1>, vector<16x112xf32>
    %15 = arith.truncf %14 : vector<16x112xf32> to vector<16x112xbf16>
    %cst_9 = arith.constant dense<0.000000e+00> : vector<16x32xf32>
    %16 = tpu.matmul %15, %1, %cst_9 {dimension_numbers = #tpu.dot_dimension_numbers<[1], [0], [0], [1], [0, 0, 1, 1], [], []>} : vector<16x112xbf16>, vector<112x32xbf16>, vector<16x32xf32> -> vector<16x32xf32>
    %17 = arith.addf %6, %16 : vector<16x32xf32>
    %18 = arith.truncf %16 : vector<16x32xf32> to vector<16x32xbf16>
    %c0_10 = arith.constant 0 : index
    %c0_11 = arith.constant 0 : index
    %c0_12 = arith.constant 0 : index
    %19 = vector.load %arg5[%c0_10, %c0_11, %c0_12] : memref<4x32x128xbf16, #tpu.memory_space<vmem>>, vector<1x32x128xbf16>
    %20 = vector.shape_cast %19 : vector<1x32x128xbf16> to vector<32x128xbf16>
    %cst_13 = arith.constant dense<0.000000e+00> : vector<16x128xf32>
    %21 = tpu.matmul %18, %20, %cst_13 {dimension_numbers = #tpu.dot_dimension_numbers<[1], [0], [0], [1], [0, 0, 1, 1], [], []>} : vector<16x32xbf16>, vector<32x128xbf16>, vector<16x128xf32> -> vector<16x128xf32>
    %22 = arith.addf %5, %21 : vector<16x128xf32>
    %c0_14 = arith.constant 0 : index
    %c1 = arith.constant 1 : index
    %23 = vector.load %arg1[%c0_14, %c1] : memref<16x4xi32, #tpu.memory_space<vmem>>, vector<16x1xi32>
    %24 = vector.broadcast %23 : vector<16x1xi32> to vector<16x112xi32>
    %25 = arith.cmpi eq, %24, %0 : vector<16x112xi32>
    %c0_15 = arith.constant 0 : index
    %c1_16 = arith.constant 1 : index
    %26 = vector.load %arg2[%c0_15, %c1_16] : memref<16x4xf32, #tpu.memory_space<vmem>>, vector<16x1xf32>
    %cst_17 = arith.constant 0.000000e+00 : f32
    %27 = vector.shape_cast %26 : vector<16x1xf32> to vector<16x1xf32>
    %28 = vector.broadcast %27 : vector<16x1xf32> to vector<16x112xf32>
    %29 = vector.broadcast %cst_17 : f32 to vector<16x112xf32>
    %30 = arith.select %25, %28, %29 : vector<16x112xi1>, vector<16x112xf32>
    %31 = arith.truncf %30 : vector<16x112xf32> to vector<16x112xbf16>
    %cst_18 = arith.constant dense<0.000000e+00> : vector<16x32xf32>
    %32 = tpu.matmul %31, %1, %cst_18 {dimension_numbers = #tpu.dot_dimension_numbers<[1], [0], [0], [1], [0, 0, 1, 1], [], []>} : vector<16x112xbf16>, vector<112x32xbf16>, vector<16x32xf32> -> vector<16x32xf32>
    %33 = arith.addf %17, %32 : vector<16x32xf32>
    %34 = arith.truncf %32 : vector<16x32xf32> to vector<16x32xbf16>
    %c1_19 = arith.constant 1 : index
    %c0_20 = arith.constant 0 : index
    %c0_21 = arith.constant 0 : index
    %35 = vector.load %arg5[%c1_19, %c0_20, %c0_21] : memref<4x32x128xbf16, #tpu.memory_space<vmem>>, vector<1x32x128xbf16>
    %36 = vector.shape_cast %35 : vector<1x32x128xbf16> to vector<32x128xbf16>
    %cst_22 = arith.constant dense<0.000000e+00> : vector<16x128xf32>
    %37 = tpu.matmul %34, %36, %cst_22 {dimension_numbers = #tpu.dot_dimension_numbers<[1], [0], [0], [1], [0, 0, 1, 1], [], []>} : vector<16x32xbf16>, vector<32x128xbf16>, vector<16x128xf32> -> vector<16x128xf32>
    %38 = arith.addf %22, %37 : vector<16x128xf32>
    %c0_23 = arith.constant 0 : index
    %c2 = arith.constant 2 : index
    %39 = vector.load %arg1[%c0_23, %c2] : memref<16x4xi32, #tpu.memory_space<vmem>>, vector<16x1xi32>
    %40 = vector.broadcast %39 : vector<16x1xi32> to vector<16x112xi32>
    %41 = arith.cmpi eq, %40, %0 : vector<16x112xi32>
    %c0_24 = arith.constant 0 : index
    %c2_25 = arith.constant 2 : index
    %42 = vector.load %arg2[%c0_24, %c2_25] : memref<16x4xf32, #tpu.memory_space<vmem>>, vector<16x1xf32>
    %cst_26 = arith.constant 0.000000e+00 : f32
    %43 = vector.shape_cast %42 : vector<16x1xf32> to vector<16x1xf32>
    %44 = vector.broadcast %43 : vector<16x1xf32> to vector<16x112xf32>
    %45 = vector.broadcast %cst_26 : f32 to vector<16x112xf32>
    %46 = arith.select %41, %44, %45 : vector<16x112xi1>, vector<16x112xf32>
    %47 = arith.truncf %46 : vector<16x112xf32> to vector<16x112xbf16>
    %cst_27 = arith.constant dense<0.000000e+00> : vector<16x32xf32>
    %48 = tpu.matmul %47, %1, %cst_27 {dimension_numbers = #tpu.dot_dimension_numbers<[1], [0], [0], [1], [0, 0, 1, 1], [], []>} : vector<16x112xbf16>, vector<112x32xbf16>, vector<16x32xf32> -> vector<16x32xf32>
    %49 = arith.addf %33, %48 : vector<16x32xf32>
    %50 = arith.truncf %48 : vector<16x32xf32> to vector<16x32xbf16>
    %c2_28 = arith.constant 2 : index
    %c0_29 = arith.constant 0 : index
    %c0_30 = arith.constant 0 : index
    %51 = vector.load %arg5[%c2_28, %c0_29, %c0_30] : memref<4x32x128xbf16, #tpu.memory_space<vmem>>, vector<1x32x128xbf16>
    %52 = vector.shape_cast %51 : vector<1x32x128xbf16> to vector<32x128xbf16>
    %cst_31 = arith.constant dense<0.000000e+00> : vector<16x128xf32>
    %53 = tpu.matmul %50, %52, %cst_31 {dimension_numbers = #tpu.dot_dimension_numbers<[1], [0], [0], [1], [0, 0, 1, 1], [], []>} : vector<16x32xbf16>, vector<32x128xbf16>, vector<16x128xf32> -> vector<16x128xf32>
    %54 = arith.addf %38, %53 : vector<16x128xf32>
    %c0_32 = arith.constant 0 : index
    %c3 = arith.constant 3 : index
    %55 = vector.load %arg1[%c0_32, %c3] : memref<16x4xi32, #tpu.memory_space<vmem>>, vector<16x1xi32>
    %56 = vector.broadcast %55 : vector<16x1xi32> to vector<16x112xi32>
    %57 = arith.cmpi eq, %56, %0 : vector<16x112xi32>
    %c0_33 = arith.constant 0 : index
    %c3_34 = arith.constant 3 : index
    %58 = vector.load %arg2[%c0_33, %c3_34] : memref<16x4xf32, #tpu.memory_space<vmem>>, vector<16x1xf32>
    %cst_35 = arith.constant 0.000000e+00 : f32
    %59 = vector.shape_cast %58 : vector<16x1xf32> to vector<16x1xf32>
    %60 = vector.broadcast %59 : vector<16x1xf32> to vector<16x112xf32>
    %61 = vector.broadcast %cst_35 : f32 to vector<16x112xf32>
    %62 = arith.select %57, %60, %61 : vector<16x112xi1>, vector<16x112xf32>
    %63 = arith.truncf %62 : vector<16x112xf32> to vector<16x112xbf16>
    %cst_36 = arith.constant dense<0.000000e+00> : vector<16x32xf32>
    %64 = tpu.matmul %63, %1, %cst_36 {dimension_numbers = #tpu.dot_dimension_numbers<[1], [0], [0], [1], [0, 0, 1, 1], [], []>} : vector<16x112xbf16>, vector<112x32xbf16>, vector<16x32xf32> -> vector<16x32xf32>
    %65 = arith.addf %49, %64 : vector<16x32xf32>
    %66 = arith.truncf %64 : vector<16x32xf32> to vector<16x32xbf16>
    %c3_37 = arith.constant 3 : index
    %c0_38 = arith.constant 0 : index
    %c0_39 = arith.constant 0 : index
    %67 = vector.load %arg5[%c3_37, %c0_38, %c0_39] : memref<4x32x128xbf16, #tpu.memory_space<vmem>>, vector<1x32x128xbf16>
    %68 = vector.shape_cast %67 : vector<1x32x128xbf16> to vector<32x128xbf16>
    %cst_40 = arith.constant dense<0.000000e+00> : vector<16x128xf32>
    %69 = tpu.matmul %66, %68, %cst_40 {dimension_numbers = #tpu.dot_dimension_numbers<[1], [0], [0], [1], [0, 0, 1, 1], [], []>} : vector<16x32xbf16>, vector<32x128xbf16>, vector<16x128xf32> -> vector<16x128xf32>
    %70 = arith.addf %54, %69 : vector<16x128xf32>
    %71 = arith.truncf %65 : vector<16x32xf32> to vector<16x32xbf16>
    %c0_41 = arith.constant 0 : index
    %c0_42 = arith.constant 0 : index
    %72 = vector.load %arg4[%c0_41, %c0_42] : memref<32x128xbf16, #tpu.memory_space<vmem>>, vector<32x128xbf16>
    %cst_43 = arith.constant dense<0.000000e+00> : vector<16x128xf32>
    %73 = tpu.matmul %71, %72, %cst_43 {dimension_numbers = #tpu.dot_dimension_numbers<[1], [0], [0], [1], [0, 0, 1, 1], [], []>} : vector<16x32xbf16>, vector<32x128xbf16>, vector<16x128xf32> -> vector<16x128xf32>
    %cst_44 = arith.constant 0.000000e+00 : f32
    %74 = vector.broadcast %cst_44 : f32 to vector<16x128xf32>
    %75 = arith.maximumf %70, %74 : vector<16x128xf32>
    %c0_45 = arith.constant 0 : index
    %c0_46 = arith.constant 0 : index
    %76 = vector.load %arg7[%c0_45, %c0_46] : memref<128x128xbf16, #tpu.memory_space<vmem>>, vector<128x128xbf16>
    %c0_47 = arith.constant 0 : index
    %c0_48 = arith.constant 0 : index
    %77 = vector.load %arg8[%c0_47, %c0_48] : memref<1x128xf32, #tpu.memory_space<vmem>>, vector<1x128xf32>
    %78 = arith.truncf %75 : vector<16x128xf32> to vector<16x128xbf16>
    %cst_49 = arith.constant dense<0.000000e+00> : vector<16x128xf32>
    %79 = tpu.matmul %78, %76, %cst_49 {dimension_numbers = #tpu.dot_dimension_numbers<[1], [0], [0], [1], [0, 0, 1, 1], [], []>} : vector<16x128xbf16>, vector<128x128xbf16>, vector<16x128xf32> -> vector<16x128xf32>
    %80 = vector.broadcast %77 : vector<1x128xf32> to vector<16x128xf32>
    %81 = arith.addf %79, %80 : vector<16x128xf32>
    %cst_50 = arith.constant 0.000000e+00 : f32
    %82 = vector.broadcast %cst_50 : f32 to vector<16x128xf32>
    %83 = arith.maximumf %81, %82 : vector<16x128xf32>
    %c0_51 = arith.constant 0 : index
    %c0_52 = arith.constant 0 : index
    %84 = vector.load %arg9[%c0_51, %c0_52] : memref<128x128xbf16, #tpu.memory_space<vmem>>, vector<128x128xbf16>
    %c0_53 = arith.constant 0 : index
    %c0_54 = arith.constant 0 : index
    %85 = vector.load %arg10[%c0_53, %c0_54] : memref<1x128xf32, #tpu.memory_space<vmem>>, vector<1x128xf32>
    %86 = arith.truncf %83 : vector<16x128xf32> to vector<16x128xbf16>
    %cst_55 = arith.constant dense<0.000000e+00> : vector<16x128xf32>
    %87 = tpu.matmul %86, %84, %cst_55 {dimension_numbers = #tpu.dot_dimension_numbers<[1], [0], [0], [1], [0, 0, 1, 1], [], []>} : vector<16x128xbf16>, vector<128x128xbf16>, vector<16x128xf32> -> vector<16x128xf32>
    %88 = vector.broadcast %85 : vector<1x128xf32> to vector<16x128xf32>
    %89 = arith.addf %87, %88 : vector<16x128xf32>
    %90 = arith.addf %89, %73 : vector<16x128xf32>
    %c0_56 = arith.constant 0 : index
    %c0_57 = arith.constant 0 : index
    %91 = vector.load %arg11[%c0_56, %c0_57] : memref<16x128xf32, #tpu.memory_space<vmem>>, vector<16x128xf32>
    tpu.vector_store %arg11[%c0_56, %c0_57], %90 {strides = array<i32>} : memref<16x128xf32, #tpu.memory_space<vmem>>, vector<16x128xf32>,
    return
  }
  func.func @transform_0(%arg0: i32) -> (i32, i32) {
    %c0_i32 = arith.constant 0 : i32
    %c0_i32_0 = arith.constant 0 : i32
    return %arg0, %c0_i32 : i32, i32
  }
  func.func @transform_1(%arg0: i32) -> (i32, i32) {
    %c0_i32 = arith.constant 0 : i32
    %c0_i32_0 = arith.constant 0 : i32
    return %arg0, %c0_i32 : i32, i32
  }
  func.func @transform_2(%arg0: i32) -> (i32, i32) {
    %c0_i32 = arith.constant 0 : i32
    %c0_i32_0 = arith.constant 0 : i32
    %c0_i32_1 = arith.constant 0 : i32
    return %c0_i32, %c0_i32_0 : i32, i32
  }
  func.func @transform_3(%arg0: i32) -> (i32, i32) {
    %c0_i32 = arith.constant 0 : i32
    %c0_i32_0 = arith.constant 0 : i32
    %c0_i32_1 = arith.constant 0 : i32
    return %c0_i32, %c0_i32_0 : i32, i32
  }
  func.func @transform_4(%arg0: i32) -> (i32, i32, i32) {
    %c0_i32 = arith.constant 0 : i32
    %c0_i32_0 = arith.constant 0 : i32
    %c0_i32_1 = arith.constant 0 : i32
    %c0_i32_2 = arith.constant 0 : i32
    return %c0_i32, %c0_i32_0, %c0_i32_1 : i32, i32, i32
  }
  func.func @transform_5(%arg0: i32) -> (i32, i32) {
    %c0_i32 = arith.constant 0 : i32
    %c0_i32_0 = arith.constant 0 : i32
    %c0_i32_1 = arith.constant 0 : i32
    return %c0_i32, %c0_i32_0 : i32, i32
  }
  func.func @transform_6(%arg0: i32) -> (i32, i32) {
    %c0_i32 = arith.constant 0 : i32
    %c0_i32_0 = arith.constant 0 : i32
    %c0_i32_1 = arith.constant 0 : i32
    return %c0_i32, %c0_i32_0 : i32, i32
  }
  func.func @transform_7(%arg0: i32) -> (i32, i32) {
    %c0_i32 = arith.constant 0 : i32
    %c0_i32_0 = arith.constant 0 : i32
    %c0_i32_1 = arith.constant 0 : i32
    return %c0_i32, %c0_i32_0 : i32, i32
  }
  func.func @transform_8(%arg0: i32) -> (i32, i32) {
    %c0_i32 = arith.constant 0 : i32
    %c0_i32_0 = arith.constant 0 : i32
    %c0_i32_1 = arith.constant 0 : i32
    return %c0_i32, %c0_i32_0 : i32, i32
  }
  func.func @transform_9(%arg0: i32) -> (i32, i32) {
    %c0_i32 = arith.constant 0 : i32
    %c0_i32_0 = arith.constant 0 : i32
    %c0_i32_1 = arith.constant 0 : i32
    return %c0_i32, %c0_i32_0 : i32, i32
  }
  func.func @transform_10(%arg0: i32) -> (i32, i32) {
    %c0_i32 = arith.constant 0 : i32
    %c0_i32_0 = arith.constant 0 : i32
    return %arg0, %c0_i32 : i32, i32
  }
}

</mosaic_0001>

<bundles_post_ra>
// kernel: wd_forward_pallas.1
= control target key start
LH: loop header
LB: loop body
LE: loop exit
PB: predicated region body
PF: predicated region fallthrough
CT: control target
= control target key end

     0   :  { %s1787_s13 = smov 0   ;;  %s2081_s0 = inlined_call_operand.vmem [shape: s32[32,4], index: 0, kind: input, shape index: {}]   ;;  %s2082_s1 = inlined_call_operand.vmem [shape: f32[32,4], index: 1, kind: input, shape index: {}]   ;;  %s2083_s2 = inlined_call_operand.vmem [shape: bf16[112,32], index: 2, kind: input, shape index: {}]   ;;  %s2084_s3 = inlined_call_operand.vmem [shape: bf16[32,128], index: 3, kind: input, shape index: {}]   ;;  %s2085_s4 = inlined_call_operand.vmem [shape: bf16[4,32,128], index: 4, kind: input, shape index: {}]   ;;  %s2086_s5 = inlined_call_operand.vmem [shape: f32[1,128], index: 5, kind: input, shape index: {}]   ;;  %s2087_s6 = inlined_call_operand.vmem [shape: bf16[128,128], index: 6, kind: input, shape index: {}]   ;;  %s2088_s7 = inlined_call_operand.vmem [shape: f32[1,128], index: 7, kind: input, shape index: {}]   ;;  %s2089_s8 = inlined_call_operand.vmem [shape: bf16[128,128], index: 8, kind: input, shape index: {}]   ;;  %s2090_s9 = inlined_call_operand.vmem [shape: f32[1,128], index: 9, kind: input, shape index: {}]   ;;  %s2091_s10 = inlined_call_operand.vmem [shape: f32[32,128], index: 10, kind: output, shape index: {}]  }
   0x1 LB: > { %s1338_s14 = sadd.s32 4294967295, %s1724_s13   ;;  %p1342_p0 = scmp.ge.s32.totalorder %s1724_s13, 1  ;;  %s1724_s13 = sphi %s1787_s13, %s20_s13  }
   0x2   : > { %p324_p1 = scmp.lt.s32.totalorder %s1724_s13, 3 }
   0x4   : > { %p325_p2 = pnand %p1342_p0, %p324_p1 }
   0x5   : > { %s1343_s15 = sshll.u32 (!%p325_p2), %s1338_s14, 1  ;;  %v1726_v0 = vmov (!%p325_p2), 0   ;;  %v1798_v1 = vld [vmem:[%s2083_s2] sm:$0xff] (!%p325_p2)   ;;  %v1727_v2 = vmov (!%p325_p2), 0.0   ;;  %v1806_v3 = vld [vmem:[%s2083_s2 + $0x8] sm:$0xff] (!%p325_p2)   ;;  %v1822_v4 = vld [vmem:[%s2083_s2 + $0x10] sm:$0xff] (!%p325_p2)   ;;  %v386_v17 = vlaneseq (!%p325_p2) }
   0x6   : > { %328 = sbr.rel (%p325_p2) target bundleno = 1514 (0x5ea), region = 60  ;;  %1657 = vset.pattern.permute.xlu0 (!%p325_p2), %v1726_v0  ;;  %p368_p3 = scmp.lt.s32.totalorder (!%p325_p2), %s1343_s15, 3  ;;  %1658 = vset.pattern.permute.xlu1 (!%p325_p2), %v1726_v0  ;;  %v1837_v10 = vld [vmem:[%s2083_s2 + $0x18] sm:$0xff] (!%p325_p2)   ;;  %v1728_v11 = vmov (!%p325_p2), 1   ;;  %v1845_v12 = vld [vmem:[%s2083_s2 + $0x20] sm:$0xff] (!%p325_p2)   ;;  %v1854_v13 = vld [vmem:[%s2083_s2 + $0x28] sm:$0xff] (!%p325_p2)  }
   0x7   : > { %1473 = vmatprep.subr.bf16.mxu1 (!%p325_p2), %v1727_v2  ;;  %1491 = vmatprep.subr.bf16.mxu0 (!%p325_p2), %v1727_v2  ;;  %vm1729_vm0 = vmmov (!%p325_p2), 0   ;;  %v1866_v14 = vld [vmem:[%s2083_s2 + $0x30] sm:$0xff] (!%p325_p2)   ;;  %v1692_v15 = vld [vmem:[%s2085_s4] sm:$0xff] (!%p325_p2)   ;;  %v1730_v16 = vmov (!%p325_p2), 2   ;;  %v1879_v18 = vand.u32 (!%p325_p2), 127, %v386_v17  ;;  %vm477_vm3 = vcmask (!%p325_p2), 916480  }
   0x8   : > { %1474 = vmatpush3.bf16.msra.mxu1 (!%p325_p2), %v1798_v1  ;;  %1487 = vmatprep.mubr.msk.bf16.mxu1 (!%p325_p2), %vm1729_vm0, %v1727_v2  ;;  %v1693_v35 = vld [vmem:[%s2085_s4 + $0x8] sm:$0xff] (!%p325_p2)   ;;  %v1731_v36 = vmov (!%p325_p2), 3   ;;  %vm541_vm6 = vcmask (!%p325_p2), 261120   ;;  %v1694_v57 = vld [vmem:[%s2085_s4 + $0x10] sm:$0xff] (!%p325_p2)   ;;  %v1695_v58 = vld [vmem:[%s2085_s4 + $0x18] sm:$0xff] (!%p325_p2)  }
   0x9   : > { %1475 = vmatprep.subr.bf16.mxu1 (!%p325_p2), %v1727_v2  ;;  %1495 = vmatprep.mubr.msk.bf16.mxu0 (!%p325_p2), %vm1729_vm0, %v1727_v2  ;;  %v1696_v59 = vld [vmem:[%s2085_s4 + $0x20] sm:$0xff] (!%p325_p2)   ;;  %v1697_v60 = vld [vmem:[%s2085_s4 + $0x28] sm:$0xff] (!%p325_p2)  }
   0xa   : > { %1492 = vmatpush3.bf16.msra.mxu0 (!%p325_p2), %v1692_v15 }
   0xb   : > { %1493 = vmatprep.subr.bf16.mxu0 (!%p325_p2), %v1727_v2 }
   0xc   : > { %1476 = vmatpush3.bf16.msra.mxu1 (!%p325_p2), %v1806_v3 }
   0xd   : > { %s2093_s15 = smov (!%p368_p3, %s1343_s15), 3  ;;  %1477 = vmatprep.subr.bf16.mxu1 %v1727_v2 }
   0xe   : > { %s1809_s20 = sshll.u32 %s2093_s15, 3  ;;  %1494 = vmatpush3.bf16.msra.mxu0 %v1693_v35  ;;  %v1708_v35 = vld [vmem:[%s2087_s6 + $0x30] sm:$0xff]  }
   0xf   : > { %s371_s23 = scalar_lea.vmem %s2081_s0, %s1809_s20  ;;  %s377_s26 = scalar_lea.vmem %s2082_s1, %s1809_s20  ;;  %1525 = vmatprep.subr.bf16.mxu0 %v1727_v2 }
  0x10   : > { %v1824_v5 = vld [vmem:[%s371_s23] sm:$0xff]  ;;  %v421_v7 = vld [vmem:[%s377_s26 + $0x8] sm:$0xff]  ;;  %1478 = vmatpush3.bf16.msra.mxu1 %v1822_v4  ;;  %s383_s25 = scalar_lea.vmem %s2091_s10, %s1809_s20 }
  0x11   : > { %v420_v6 = vld [vmem:[%s377_s26] sm:$0xff]  ;;  %413 = vperm.xlu0 %1657, %v1824_v5   ;;  %v1830_v9 = vld [vmem:[%s371_s23 + $0x8] sm:$0xff]  ;;  %1479 = vmatprep.subr.bf16.mxu1 %v1727_v2 }
  0x12   : > { %v1828_v8 = vpack.i.bf16 %v421_v7, %v420_v6 }
  0x14   : > { %1660 = vperm.xlu1 %1658, %v1828_v8   ;;  %1480 = vmatpush3.bf16.msra.mxu1 %v1837_v10 }
  0x15   : > { %416 = vperm.xlu0 %1657, %v1830_v9   ;;  %1481 = vmatprep.subr.bf16.mxu1 %v1727_v2 }
  0x18   : > { %1664 = vset.pattern.permute.xlu1 %v1728_v11  ;;  %1482 = vmatpush3.bf16.msra.mxu1 %v1845_v12 }
  0x19   : > { %589 = vperm.xlu1 %1664, %v1824_v5   ;;  %1665 = vset.pattern.permute.xlu0 %v1728_v11 }
  0x1a   : > { %592 = vperm.xlu0 %1665, %v1830_v9   ;;  %1483 = vmatprep.subr.bf16.mxu1 %v1727_v2 }
  0x1c   : > { %1484 = vmatpush3.bf16.msra.mxu1 %v1854_v13 }
  0x1d   : > { %1667 = vperm.xlu1 %1664, %v1828_v8   ;;  %1485 = vmatprep.subr.bf16.mxu1 %v1727_v2 }
  0x1e   : > { %1672 = vset.pattern.permute.xlu0 %v1730_v16 }
  0x1f   : > { %721 = vperm.xlu0 %1672, %v1830_v9  }
  0x20   : > { %1486 = vmatpush3.bf16.msra.mxu1 %v1866_v14 }
  0x21   : > { %1499 = vmatprep.subr.bf16.mxu1 %v1727_v2  ;;  %1671 = vset.pattern.permute.xlu1 %v1730_v16 }
  0x22   : > { %718 = vperm.xlu1 %1671, %v1824_v5  }
  0x23   : > { %1679 = vset.pattern.permute.xlu0 %v1731_v36 }
  0x24   : > { %850 = vperm.xlu0 %1679, %v1830_v9  }
  0x26   : > { %1674 = vperm.xlu1 %1671, %v1828_v8  }
  0x2a   : > { %1678 = vset.pattern.permute.xlu1 %v1731_v36  ;;  %v1709_v36 = vld [vmem:[%s2087_s6 + $0x38] sm:$0xff]  }
  0x2b   : > { %847 = vperm.xlu1 %1678, %v1824_v5  }
  0x2f   : > { %1681 = vperm.xlu1 %1678, %v1828_v8  }
  0x90   : > { %v414_v19 = vpop.permute.xlu0 %413 }
  0x91   : > { %vm418_vm1 = vcmp.eq.s32.totalorder %v414_v19, %v1879_v18 }
  0x93   : > { %v1661_v20 = vpop.permute.xlu1 %1660 }
  0x94   : > { %v1663_v21 = vunpack.i.h.bf16 %v1661_v20  ;;  %v1662_v22 = vunpack.i.l.bf16 %v1661_v20  ;;  %v417_v23 = vpop.permute.xlu0 %416 }
  0x95   : > { %vm419_vm2 = vcmp.eq.s32.totalorder %v417_v23, %v1879_v18 }
  0x96   : > { %v432_v24 = vsel %vm418_vm1, %v1662_v22, 0.0  ;;  %v433_v25 = vsel %vm419_vm2, %v1663_v21, 0.0 }
  0x97   : > { %v434_v26 = vpack.c.bf16 %v433_v25, %v432_v24 }
  0x98   : > { %v590_v27 = vpop.permute.xlu1 %589 }
  0x99   : > { %1488 = vmatmul.mubr.msk.bf16.vlgmr.msra.gmra.mrb[0].mxu1 %vm477_vm3, %v434_v26  ;;  %v593_v29 = vpop.permute.xlu0 %592  ;;  %vm594_vm4 = vcmp.eq.s32.totalorder %v590_v27, %v1879_v18 }
  0x9a   : > { %1500 = vmatpush3.bf16.msra.mxu1 %v1798_v1  ;;  %1513 = vmatprep.mubr.msk.bf16.mxu1 %vm1729_vm0, %v1727_v2  ;;  %vm595_vm5 = vcmp.eq.s32.totalorder %v593_v29, %v1879_v18 }
  0x9b   : > { %1501 = vmatprep.subr.bf16.mxu1 %v1727_v2 }
  0x9c   : > { %v1668_v28 = vpop.permute.xlu1 %1667 }
  0x9d   : > { %v1670_v30 = vunpack.i.h.bf16 %v1668_v28  ;;  %v1669_v31 = vunpack.i.l.bf16 %v1668_v28  ;;  %v1702_v28 = vld [vmem:[%s2087_s6] sm:$0xff]  }
  0x9e   : > { %1502 = vmatpush3.bf16.msra.mxu1 %v1806_v3  ;;  %v722_v44 = vpop.permute.xlu0 %721 }
  0x9f   : > { %1503 = vmatprep.subr.bf16.mxu1 %v1727_v2  ;;  %v604_v32 = vsel %vm594_vm4, %v1669_v31, 0.0  ;;  %v605_v33 = vsel %vm595_vm5, %v1670_v30, 0.0  ;;  %vm724_vm8 = vcmp.eq.s32.totalorder %v722_v44, %v1879_v18  ;;  %v1703_v30 = vld [vmem:[%s2087_s6 + $0x8] sm:$0xff]   ;;  %v1704_v31 = vld [vmem:[%s2087_s6 + $0x10] sm:$0xff]  }
  0xa0   : > { %v606_v34 = vpack.c.bf16 %v605_v33, %v604_v32  ;;  %v1705_v32 = vld [vmem:[%s2087_s6 + $0x18] sm:$0xff]   ;;  %v1706_v33 = vld [vmem:[%s2087_s6 + $0x20] sm:$0xff]  }
  0xa1   : > { %v719_v42 = vpop.permute.xlu1 %718 }
  0xa2   : > { %1504 = vmatpush3.bf16.msra.mxu1 %v1822_v4  ;;  %vm723_vm7 = vcmp.eq.s32.totalorder %v719_v42, %v1879_v18 }
  0xa3   : > { %1505 = vmatprep.subr.bf16.mxu1 %v1727_v2 }
  0xa5   : > { %v1675_v43 = vpop.permute.xlu1 %1674 }
  0xa6   : > { %1506 = vmatpush3.bf16.msra.mxu1 %v1837_v10  ;;  %v1677_v45 = vunpack.i.h.bf16 %v1675_v43  ;;  %v1676_v46 = vunpack.i.l.bf16 %v1675_v43 }
  0xa7   : > { %1507 = vmatprep.subr.bf16.mxu1 %v1727_v2 }
  0xa8   : > { %v733_v47 = vsel %vm723_vm7, %v1676_v46, 0.0  ;;  %v734_v48 = vsel %vm724_vm8, %v1677_v45, 0.0 }
  0xa9   : > { %v735_v53 = vpack.c.bf16 %v734_v48, %v733_v47  ;;  %v1710_v48 = vld [vmem:[%s2089_s8] sm:$0xff]  }
  0xaa   : > { %1508 = vmatpush3.bf16.msra.mxu1 %v1845_v12  ;;  %v848_v16 = vpop.permute.xlu1 %847 }
  0xab   : > { %1509 = vmatprep.subr.bf16.mxu1 %v1727_v2  ;;  %vm852_vm9 = vcmp.eq.s32.totalorder %v848_v16, %v1879_v18 }
  0xae   : > { %1510 = vmatpush3.bf16.msra.mxu1 %v1854_v13  ;;  %v1682_v17 = vpop.permute.xlu1 %1681 }
  0xaf   : > { %1511 = vmatprep.subr.bf16.mxu1 %v1727_v2  ;;  %v1684_v19 = vunpack.i.h.bf16 %v1682_v17  ;;  %v1683_v20 = vunpack.i.l.bf16 %v1682_v17 }
  0xb2   : > { %1512 = vmatpush3.bf16.msra.mxu1 %v1866_v14 }
  0xb3   : > { %1517 = vmatprep.subr.bf16.mxu1 %v1727_v2 }
  0xb5   : > { %1514 = vmatmul.mubr.msk.bf16.vlgmr.msra.gmra.mrb[4].mxu1 %vm477_vm3, %v606_v34  ;;  %v1707_v34 = vld [vmem:[%s2087_s6 + $0x28] sm:$0xff]  }
  0xb6   : > { %1521 = vmatprep.mubr.msk.bf16.mxu1 %vm1729_vm0, %v1727_v2  ;;  %1518 = vmatpush3.bf16.msra.mxu1 %v1694_v57  ;;  %v1388_v57 = vld [vmem:[%s2088_s7] ss:$0 sm:$0xff] }
  0xb7   : > { %1519 = vmatprep.subr.bf16.mxu1 %v1727_v2 }
  0xba   : > { %1520 = vmatpush3.bf16.msra.mxu1 %v1695_v58 }
  0xbb   : > { %1543 = vmatprep.subr.bf16.mxu1 %v1727_v2 }
 0x16c   : > { %v515_v37 = vpop.f32.mrb[0].mxu1 }
 0x16d   : > { %v1489_v38 = vpop.f32.mrb[1].mxu1 }
 0x16e   : > { %v518_v39 = vpop.f32.mrb[2].mxu1 }
 0x16f   : > { %v524_v40 = vpack.c.bf16 %v518_v39, %v515_v37  ;;  %v1490_v41 = vpop.f32.mrb[3].mxu1 }
 0x171   : > { %1496 = vmatmul.mubr.msk.bf16.vlgmr.msra.gmra.mrb[0].mxu0 %vm541_vm6, %v524_v40 }
 0x172   : > { %1526 = vmatpush3.bf16.msra.mxu0 %v1798_v1  ;;  %1539 = vmatprep.mubr.msk.bf16.mxu0 %vm1729_vm0, %v1727_v2 }
 0x173   : > { %1527 = vmatprep.subr.bf16.mxu0 %v1727_v2 }
 0x176   : > { %1528 = vmatpush3.bf16.msra.mxu0 %v1806_v3 }
 0x177   : > { %1529 = vmatprep.subr.bf16.mxu0 %v1727_v2 }
 0x17a   : > { %1530 = vmatpush3.bf16.msra.mxu0 %v1822_v4 }
 0x17b   : > { %1531 = vmatprep.subr.bf16.mxu0 %v1727_v2 }
 0x17e   : > { %1532 = vmatpush3.bf16.msra.mxu0 %v1837_v10 }
 0x17f   : > { %1533 = vmatprep.subr.bf16.mxu0 %v1727_v2 }
 0x182   : > { %1534 = vmatpush3.bf16.msra.mxu0 %v1845_v12 }
 0x183   : > { %1535 = vmatprep.subr.bf16.mxu0 %v1727_v2 }
 0x186   : > { %1536 = vmatpush3.bf16.msra.mxu0 %v1854_v13 }
 0x187   : > { %1537 = vmatprep.subr.bf16.mxu0 %v1727_v2 }
 0x188   : > { %v644_v49 = vpop.f32.mrb[4].mxu1 }
 0x189   : > { %v651_v50 = vadd.f32 %v644_v49, %v515_v37  ;;  %v1515_v51 = vpop.f32.mrb[5].mxu1  ;;  %v1349_v37 = vld [vmem:[%s2086_s5] ss:$0 sm:$0xff] }
 0x18a   : > { %v647_v52 = vpop.f32.mrb[6].mxu1  ;;  %1538 = vmatpush3.bf16.msra.mxu0 %v1866_v14  ;;  %v1712_v51 = vld [vmem:[%s2089_s8 + $0x10] sm:$0xff]  }
 0x18b   : > { %v652_v54 = vadd.f32 %v647_v52, %v518_v39  ;;  %v653_v55 = vpack.c.bf16 %v647_v52, %v644_v49  ;;  %v1516_v56 = vpop.f32.mrb[7].mxu1  ;;  %1577 = vmatprep.subr.bf16.mxu0 %v1727_v2  ;;  %v1713_v52 = vld [vmem:[%s2089_s8 + $0x18] sm:$0xff]  }
 0x18c   : > { %v1717_v56 = vld [vmem:[%s2089_s8 + $0x38] sm:$0xff]  }
 0x18d   : > { %1540 = vmatmul.mubr.msk.bf16.vlgmr.msra.gmra.mrb[4].mxu0 %vm477_vm3, %v735_v53  ;;  %1522 = vmatmul.mubr.msk.bf16.vlgmr.msra.gmra.mrb[8].mxu1 %vm541_vm6, %v653_v55  ;;  %v1714_v53 = vld [vmem:[%s2089_s8 + $0x20] sm:$0xff]   ;;  %v1716_v55 = vld [vmem:[%s2089_s8 + $0x30] sm:$0xff]  }
 0x18e   : > { %1581 = vmatprep.mubr.msk.bf16.mxu0 %vm1729_vm0, %v1727_v2  ;;  %1544 = vmatpush3.bf16.msra.mxu1 %v1696_v59 }
 0x18f   : > { %1547 = vmatprep.mubr.msk.bf16.mxu1 %vm1729_vm0, %v1727_v2  ;;  %1545 = vmatprep.subr.bf16.mxu1 %v1727_v2 }
 0x192   : > { %1546 = vmatpush3.bf16.msra.mxu1 %v1697_v60 }
 0x193   : > { %1551 = vmatprep.subr.bf16.mxu1 %v1727_v2 }
 0x244   : > { %v1953_v61 = vpop.f32.mrb[0].mxu0 }
 0x245   : > { %v1497_v62 = vpop.f32.mrb[1].mxu0  ;;  %v586_v38 = vadd.f32 %v1349_v37, %v1953_v61 }
 0x246   : > { %v1955_v63 = vpop.f32.mrb[2].mxu0 }
 0x247   : > { %v1498_v0 = vpop.f32.mrb[3].mxu0  ;;  %v587_v40 = vadd.f32 %v1349_v37, %v1955_v63 }
 0x260   : > { %v773_v5 = vpop.f32.mrb[4].mxu0 }
 0x261   : > { %v780_v6 = vadd.f32 %v773_v5, %v651_v50  ;;  %v1541_v7 = vpop.f32.mrb[5].mxu0  ;;  %v1711_v50 = vld [vmem:[%s2089_s8 + $0x8] sm:$0xff]  }
 0x262   : > { %v776_v8 = vpop.f32.mrb[6].mxu0 }
 0x263   : > { %v781_v9 = vadd.f32 %v776_v8, %v652_v54  ;;  %v782_v11 = vpack.c.bf16 %v776_v8, %v773_v5  ;;  %v1542_v15 = vpop.f32.mrb[7].mxu0  ;;  %v1715_v54 = vld [vmem:[%s2089_s8 + $0x28] sm:$0xff]  }
 0x265   : > { %1548 = vmatmul.mubr.msk.bf16.vlgmr.msra.gmra.mrb[8].mxu1 %vm541_vm6, %v782_v11 }
 0x266   : > { %1552 = vmatpush3.bf16.msra.mxu1 %v1798_v1  ;;  %1565 = vmatprep.mubr.msk.bf16.mxu1 %vm1729_vm0, %v1727_v2  ;;  %v851_v1 = vpop.permute.xlu0 %850 }
 0x267   : > { %1553 = vmatprep.subr.bf16.mxu1 %v1727_v2  ;;  %vm853_vm10 = vcmp.eq.s32.totalorder %v851_v1, %v1879_v18  ;;  %v1701_v18 = vld [vmem:[%s2084_s3 + $0x8] sm:$0xff]  }
 0x26a   : > { %1554 = vmatpush3.bf16.msra.mxu1 %v1806_v3  ;;  %v862_v3 = vsel %vm852_vm9, %v1683_v20, 0.0 }
 0x26b   : > { %1555 = vmatprep.subr.bf16.mxu1 %v1727_v2 }
 0x26e   : > { %1556 = vmatpush3.bf16.msra.mxu1 %v1822_v4  ;;  %v863_v4 = vsel %vm853_vm10, %v1684_v19, 0.0 }
 0x26f   : > { %1557 = vmatprep.subr.bf16.mxu1 %v1727_v2 }
 0x272   : > { %1558 = vmatpush3.bf16.msra.mxu1 %v1837_v10  ;;  %v1698_v10 = vld [vmem:[%s2085_s4 + $0x30] sm:$0xff]  }
 0x273   : > { %1559 = vmatprep.subr.bf16.mxu1 %v1727_v2 }
 0x276   : > { %1560 = vmatpush3.bf16.msra.mxu1 %v1845_v12  ;;  %v864_v12 = vpack.c.bf16 %v863_v4, %v862_v3 }
 0x277   : > { %1561 = vmatprep.subr.bf16.mxu1 %v1727_v2 }
 0x27a   : > { %1562 = vmatpush3.bf16.msra.mxu1 %v1854_v13  ;;  %v1699_v13 = vld [vmem:[%s2084_s3] sm:$0xff]  }
 0x27b   : > { %1563 = vmatprep.subr.bf16.mxu1 %v1727_v2  ;;  %1578 = vmatpush3.bf16.msra.mxu0 %v1699_v13 }
 0x27c   : > { %1579 = vmatprep.subr.bf16.mxu0 %v1727_v2 }
 0x27e   : > { %1564 = vmatpush3.bf16.msra.mxu1 %v1866_v14  ;;  %v1700_v14 = vld [vmem:[%s2085_s4 + $0x38] sm:$0xff]  }
 0x27f   : > { %1569 = vmatprep.subr.bf16.mxu1 %v1727_v2  ;;  %1580 = vmatpush3.bf16.msra.mxu0 %v1701_v18 }
 0x280   : > { %1585 = vmatprep.subr.bf16.mxu0 %v1727_v2 }
 0x281   : > { %1566 = vmatmul.mubr.msk.bf16.vlgmr.msra.gmra.mrb[12].mxu1 %vm477_vm3, %v864_v12 }
 0x282   : > { %1570 = vmatpush3.bf16.msra.mxu1 %v1698_v10  ;;  %1573 = vmatprep.mubr.msk.bf16.mxu1 %vm1729_vm0, %v1727_v2 }
 0x283   : > { %1571 = vmatprep.subr.bf16.mxu1 %v1727_v2 }
 0x286   : > { %1572 = vmatpush3.bf16.msra.mxu1 %v1700_v14 }
 0x354   : > { %v902_v21 = vpop.f32.mrb[12].mxu1 }
 0x355   : > { %v909_v22 = vadd.f32 %v902_v21, %v780_v6  ;;  %v1567_v23 = vpop.f32.mrb[13].mxu1 }
 0x356   : > { %v905_v24 = vpop.f32.mrb[14].mxu1 }
 0x357   : > { %v910_v25 = vadd.f32 %v905_v24, %v781_v9  ;;  %v911_v26 = vpack.c.bf16 %v905_v24, %v902_v21  ;;  %v1568_v27 = vpop.f32.mrb[15].mxu1 }
 0x359   : > { %v975_v29 = vpack.c.bf16 %v910_v25, %v909_v22  ;;  %1574 = vmatmul.mubr.msk.bf16.vlgmr.msra.gmra.mrb[8].mxu1 %vm541_vm6, %v911_v26 }
 0x35b   : > { %1582 = vmatmul.mubr.msk.bf16.vlgmr.msra.gmra.mrb[8].mxu0 %vm541_vm6, %v975_v29 }
 0x35c   : > { %1586 = vmatpush3.bf16.msra.mxu0 %v1702_v28  ;;  %1601 = vmatprep.mubr.msk.bf16.mxu0 %vm1729_vm0, %v1727_v2 }
 0x35d   : > { %1587 = vmatprep.subr.bf16.mxu0 %v1727_v2 }
 0x360   : > { %1588 = vmatpush3.bf16.msra.mxu0 %v1703_v30 }
 0x361   : > { %1589 = vmatprep.subr.bf16.mxu0 %v1727_v2 }
 0x364   : > { %1590 = vmatpush3.bf16.msra.mxu0 %v1704_v31 }
 0x365   : > { %1591 = vmatprep.subr.bf16.mxu0 %v1727_v2 }
 0x368   : > { %1592 = vmatpush3.bf16.msra.mxu0 %v1705_v32 }
 0x369   : > { %1593 = vmatprep.subr.bf16.mxu0 %v1727_v2 }
 0x36c   : > { %1594 = vmatpush3.bf16.msra.mxu0 %v1706_v33 }
 0x36d   : > { %1595 = vmatprep.subr.bf16.mxu0 %v1727_v2 }
 0x370   : > { %1596 = vmatpush3.bf16.msra.mxu0 %v1707_v34 }
 0x371   : > { %1597 = vmatprep.subr.bf16.mxu0 %v1727_v2 }
 0x374   : > { %1598 = vmatpush3.bf16.msra.mxu0 %v1708_v35 }
 0x375   : > { %1599 = vmatprep.subr.bf16.mxu0 %v1727_v2 }
 0x378   : > { %1600 = vmatpush3.bf16.msra.mxu0 %v1709_v36 }
 0x379   : > { %1605 = vmatprep.subr.bf16.mxu0 %v1727_v2 }
 0x42c   : > { %v966_v39 = vpop.f32.mrb[8].mxu1 }
 0x42d   : > { %v1626_v41 = vadd.f32 %v966_v39, %v586_v38  ;;  %v1575_v42 = vpop.f32.mrb[9].mxu1 }
 0x42e   : > { %v969_v43 = vpop.f32.mrb[10].mxu1 }
 0x42f   : > { %v1628_v44 = vadd.f32 %v969_v43, %v587_v40  ;;  %v1576_v45 = vpop.f32.mrb[11].mxu1  ;;  %v1036_v46 = vmax.f32 %v1626_v41, 0.0 }
 0x431   : > { %v1037_v47 = vmax.f32 %v1628_v44, 0.0 }
 0x433   : > { %v1055_v49 = vpack.c.bf16 %v1037_v47, %v1036_v46 }
 0x435   : > { %1602 = vmatmul.mubr.bf16.vlgmr.msra.gmra.mrb[12].mxu0 %v1055_v49 }
 0x436   : > { %1606 = vmatpush3.bf16.msra.mxu0 %v1710_v48  ;;  %1621 = vmatprep.mubr.msk.bf16.mxu0 %vm1729_vm0, %v1727_v2 }
 0x437   : > { %1607 = vmatprep.subr.bf16.mxu0 %v1727_v2 }
 0x43a   : > { %1608 = vmatpush3.bf16.msra.mxu0 %v1711_v50 }
 0x43b   : > { %1609 = vmatprep.subr.bf16.mxu0 %v1727_v2 }
 0x43e   : > { %1610 = vmatpush3.bf16.msra.mxu0 %v1712_v51 }
 0x43f   : > { %1611 = vmatprep.subr.bf16.mxu0 %v1727_v2 }
 0x442   : > { %1612 = vmatpush3.bf16.msra.mxu0 %v1713_v52 }
 0x443   : > { %1613 = vmatprep.subr.bf16.mxu0 %v1727_v2 }
 0x446   : > { %1614 = vmatpush3.bf16.msra.mxu0 %v1714_v53 }
 0x447   : > { %1615 = vmatprep.subr.bf16.mxu0 %v1727_v2 }
 0x44a   : > { %1616 = vmatpush3.bf16.msra.mxu0 %v1715_v54 }
 0x44b   : > { %1617 = vmatprep.subr.bf16.mxu0 %v1727_v2 }
 0x44e   : > { %1618 = vmatpush3.bf16.msra.mxu0 %v1716_v55 }
 0x44f   : > { %1619 = vmatprep.subr.bf16.mxu0 %v1727_v2  ;;  %v1397_v2 = vld [vmem:[%s2090_s9] ss:$0 sm:$0xff] }
 0x452   : > { %1620 = vmatpush3.bf16.msra.mxu0 %v1717_v56 }
 0x508   : > { %v1144_v58 = vpop.f32.mrb[12].mxu0 }
 0x509   : > { %v1145_v59 = vadd.f32 %v1388_v57, %v1144_v58  ;;  %v1603_v60 = vpop.f32.mrb[13].mxu0 }
 0x50a   : > { %v1147_v61 = vpop.f32.mrb[14].mxu0 }
 0x50b   : > { %v1148_v62 = vadd.f32 %v1388_v57, %v1147_v61  ;;  %v1604_v63 = vpop.f32.mrb[15].mxu0  ;;  %v1151_v0 = vmax.f32 %v1145_v59, 0.0 }
 0x50d   : > { %v1152_v5 = vmax.f32 %v1148_v62, 0.0 }
 0x50f   : > { %v1170_v6 = vpack.c.bf16 %v1152_v5, %v1151_v0 }
 0x511   : > { %1622 = vmatmul.mubr.bf16.vlgmr.msra.gmra.mrb[8].mxu0 %v1170_v6 }
 0x5e4   : > { %v1259_v7 = vpop.f32.mrb[8].mxu0 }
 0x5e5   : > { %v1260_v8 = vadd.f32 %v1397_v2, %v1259_v7  ;;  %v1623_v9 = vpop.f32.mrb[9].mxu0 }
 0x5e6   : > { %v1262_v11 = vpop.f32.mrb[10].mxu0 }
 0x5e7   : > { %1268 = vst [vmem:[%s383_s25] sm:$0xff] %v1260_v8  ;;  %v1263_v15 = vadd.f32 %v1397_v2, %v1262_v11  ;;  %v1624_v16 = vpop.f32.mrb[11].mxu0 }
 0x5e9   : > { %1269 = vst [vmem:[%s383_s25 + $0x8] sm:$0xff] %v1263_v15 }
 0x5ea PF: > { %s20_s13 = sadd.s32 1, %s1724_s13  }
 0x5eb   : > { %p17_p4 = scmp.ge.s32.totalorder %s20_s13, 4  }
 0x5ed   :  { %19 = sbr.rel (!%p17_p4) target bundleno = 1 (0x1), region = 96 }

</bundles_post_ra>
